<compile_context>
chip_gen: v7x
topology: tpu7x:2x2x1
jax: 0.10.0
libtpu: 0.0.40
codegen_flags: <defaults>
</compile_context>

<pallas_src>
import jax
import jax.numpy as jnp
from jax.experimental import pallas as pl
from jax.experimental.pallas import tpu as pltpu


# ---------------------------------------------------------------------------
# Kernels
# ---------------------------------------------------------------------------

def _rowblock_kernel(x_ref, o_ref):
    """Whole-flat-row blocks.

    x_ref is either (tb, C, W) (direct 3-D consumption, no external flatten)
    or (tb, n) (pre-flattened).  o_ref is (tb, 3*n).  The activation is
    computed once per element (in f32) and written three times with static,
    lane-dense column stores; the flatten is absorbed into the column offsets.
    """
    if len(x_ref.shape) == 3:
        _, C, W = x_ref.shape
        for c in range(C):                                   # static unroll
            a = jnp.maximum(jnp.tanh(x_ref[:, c, :].astype(jnp.float32)), 0.0)
            a = a.astype(o_ref.dtype)
            for r in range(3):
                col = (r * C + c) * W                        # 128-aligned
                o_ref[:, col:col + W] = a
    else:
        n = x_ref.shape[1]
        a = jnp.maximum(jnp.tanh(x_ref[...].astype(jnp.float32)), 0.0)
        a = a.astype(o_ref.dtype)
        for r in range(3):
            o_ref[:, r * n:(r + 1) * n] = a


def _colblock_kernel(x_ref, o_ref):
    """Column-tiled path: one (tb, tn) output block per grid step.  The replica
    index only changes the output block position (see index_map), so the input
    block is reused across the innermost grid axis without re-DMA; tanh is
    recomputed per replica (cheaper than a VMEM scratch + extra VMEM copy)."""
    v = x_ref[...].astype(jnp.float32)
    o_ref[...] = jnp.maximum(jnp.tanh(v), 0.0).astype(o_ref.dtype)


def _fallback_kernel(x_ref, o_ref):
    """Unaligned fallback: x_ref (tb, C, W) -> o_ref (tb, 3, C, W) with a single
    broadcast store (keeps the input layout; the flatten happens outside)."""
    a = jnp.maximum(jnp.tanh(x_ref[...].astype(jnp.float32)), 0.0)
    o_ref[...] = jnp.broadcast_to(a[:, None], o_ref.shape).astype(o_ref.dtype)


# ---------------------------------------------------------------------------
# Tile selection helpers (byte-budget driven, divisor based)
# ---------------------------------------------------------------------------

_OUT_BLOCK_BYTES = 2 << 20   # ~2 MiB output blocks: >=85% of HBM roofline per
_IN_BLOCK_BYTES = 2 << 20    # measured tile sweeps, safe on every generation.

_direct_3d_ok = None         # None: untested, True: verified, False: failed


def _ceil_to(v, m):
    return -(-v // m) * m


def _sublane_base(itemsize):
    # rows per packed sublane group for the output's batch (second-minor) dim
    return {4: 8, 2: 16, 1: 32}.get(itemsize, 8)


def _largest_divisor(n, base, cap):
    """Largest multiple of `base` dividing `n` that is <= cap (None if none)."""
    cap = min(cap, n)
    if cap < base or n % base != 0:
        return None
    best = None
    for d in range(base, cap + 1, base):
        if n % d == 0:
            best = d
    return best


def _pick_row_tile(B, sub, max_rows):
    """Rows per whole-row block: full B (always layout-legal) if it fits the
    byte budget, else the largest multiple-of-`sub` divisor of B within it."""
    max_rows = int(max_rows)
    if max_rows <= 0:
        return None
    if B <= max_rows:
        return B
    if B % sub != 0:
        return None
    return _largest_divisor(B, sub, min(max_rows, 1024))


# ---------------------------------------------------------------------------
# pallas_call wrappers
# ---------------------------------------------------------------------------

def _call_rowblock(x, tb):
    """Whole flat rows per block; replica axis handled in-kernel (3 stores)."""
    if x.ndim == 3:
        B, C, W = x.shape
        n = C * W
        in_spec = pl.BlockSpec((tb, C, W), lambda i: (i, 0, 0))
    else:
        B, n = x.shape
        in_spec = pl.BlockSpec((tb, n), lambda i: (i, 0))
    return pl.pallas_call(
        _rowblock_kernel,
        out_shape=jax.ShapeDtypeStruct((B, 3 * n), x.dtype),
        grid_spec=pltpu.PrefetchScalarGridSpec(
            num_scalar_prefetch=0,
            grid=(B // tb,),
            in_specs=[in_spec],
            out_specs=pl.BlockSpec((tb, 3 * n), lambda i: (i, 0)),
        ),
        # "parallel" lets the runtime shard the batch axis across TensorCores
        # on multi-core parts (v7x); CORE_PARALLEL is generation-specific so we
        # keep the portable hint.
        compiler_params=pltpu.CompilerParams(dimension_semantics=("parallel",)),
    )(x)


def _call_colblock(x2, tb, in_block_bytes):
    """Rows too wide for one block: (tb, tn) tiles, replica axis innermost."""
    B, n = x2.shape
    dsize = x2.dtype.itemsize
    tn = _largest_divisor(n, 128, max(128, in_block_bytes // (tb * dsize)))
    nj = n // tn
    return pl.pallas_call(
        _colblock_kernel,
        out_shape=jax.ShapeDtypeStruct((B, 3 * n), x2.dtype),
        grid_spec=pltpu.PrefetchScalarGridSpec(
            num_scalar_prefetch=0,
            grid=(B // tb, nj, 3),   # replica innermost -> input block not re-DMA'd
            in_specs=[pl.BlockSpec((tb, tn), lambda i, j, r: (i, j))],
            out_specs=pl.BlockSpec((tb, tn),
                                   lambda i, j, r, _nj=nj: (i, r * _nj + j)),
        ),
        compiler_params=pltpu.CompilerParams(
            dimension_semantics=("parallel", "parallel", "arbitrary")),
    )(x2)


def _call_fallback(x):
    """Tiny / unaligned shapes: batch-chunked so VMEM is never overcommitted."""
    B, C, W = x.shape
    dsize = x.dtype.itemsize
    # padded bytes of one (C, W) plane in VMEM (second-minor -> 8, minor -> 128)
    plane = _ceil_to(max(C, 1), 8) * _ceil_to(max(W, 1), 128) * dsize
    tb = int(max(1, min(B, (1 << 20) // plane)))
    out4 = pl.pallas_call(
        _fallback_kernel,
        out_shape=jax.ShapeDtypeStruct((B, 3, C, W), x.dtype),
        grid_spec=pltpu.PrefetchScalarGridSpec(
            num_scalar_prefetch=0,
            grid=(pl.cdiv(B, tb),),
            in_specs=[pl.BlockSpec((tb, C, W), lambda i: (i, 0, 0))],
            out_specs=pl.BlockSpec((tb, 3, C, W), lambda i: (i, 0, 0, 0)),
        ),
        compiler_params=pltpu.CompilerParams(dimension_semantics=("parallel",)),
    )(x)
    # Flatten of the (tiny / unaligned) fallback output happens outside.
    return out4.reshape(B, 3 * C * W)


# ---------------------------------------------------------------------------
# Forward pass
# ---------------------------------------------------------------------------

def model_forward(x, *, out_block_bytes=_OUT_BLOCK_BYTES,
                  in_block_bytes=_IN_BLOCK_BYTES):
    """relu(tanh(cat([x, x, x], dim=1).reshape(B, -1))) for a 3-D x (B, C, W)."""
    global _direct_3d_ok
    assert x.ndim == 3, "model expects a 3-D input (B, C, W)"
    # TODO(synk): the torch sigmoid branch fires only when cat(...).shape == (1, 3),
    # which is unreachable for a 3-D input, so only the tanh->relu path exists.
    B, C, W = x.shape
    n = C * W
    dsize = x.dtype.itemsize
    sub = _sublane_base(dsize)

    # ---- Path A: consume the 3-D input directly (no out-of-kernel flatten /
    # relayout pass over HBM); whole flat rows per block.
    if W % 128 == 0 and 1 <= C <= 64 and _direct_3d_ok is not False:
        tb = _pick_row_tile(B, sub, out_block_bytes // (3 * n * dsize))
        if tb is not None:
            try:
                out = _call_rowblock(x, tb)
                if _direct_3d_ok is None:
                    jax.block_until_ready(out)  # surface deferred errors once
                    _direct_3d_ok = True
                return out
            except Exception:
                # Guard against Mosaic lowering gaps for the in-kernel channel
                # slice on some toolchains; fall back to the proven paths below.
                _direct_3d_ok = False

    # ---- Path B: pre-flattened, lane-aligned paths.
    if n % 128 == 0:
        x2 = x.reshape(B, n)
        tb = _pick_row_tile(B, sub, out_block_bytes // (3 * n * dsize))
        if tb is not None:
            # Whole-row blocks: replica grid axis dropped, 3 lane-dense stores.
            return _call_rowblock(x2, tb)
        tb = _pick_row_tile(B, sub, min(512, in_block_bytes // (128 * dsize)))
        if tb is not None:
            return _call_colblock(x2, tb, in_block_bytes)

    # ---- Path C: tiny / unaligned fallback.
    return _call_fallback(x)


def _reference(x):
    y = jnp.concatenate([x, x, x], axis=1)
    return jax.nn.relu(jnp.tanh(y.reshape(y.shape[0], -1)))


if __name__ == "__main__":
    key = jax.random.PRNGKey(0)
    k1, k2, k3, k4, k5 = jax.random.split(key, 5)

    # 1) The module's own shape (2, 3, 4): tiny/unaligned fallback path.
    x = jax.random.normal(k1, (2, 3, 4), dtype=jnp.float32)
    out = jax.block_until_ready(model_forward(x))
    assert out.shape == (2, 36), out.shape
    assert jnp.allclose(out, _reference(x), atol=1e-6), "mismatch (fallback path)"

    # 2) Lane-aligned shape -> direct 3-D row-block path (no external flatten).
    x2 = jax.random.normal(k2, (8, 3, 128), dtype=jnp.float32)
    out2 = jax.block_until_ready(model_forward(x2))
    assert out2.shape == (8, 3 * 3 * 128), out2.shape
    assert jnp.allclose(out2, _reference(x2), atol=1e-6), "mismatch (3-D row path)"

    # 3) n aligned but W not -> flatten + whole-row blocks (no replica axis).
    x3 = jax.random.normal(k3, (8, 2, 192), dtype=jnp.float32)
    out3 = jax.block_until_ready(model_forward(x3))
    assert jnp.allclose(out3, _reference(x3), atol=1e-6), "mismatch (row-fit path)"

    # 4) Force the column-tiled replica-grid path with tiny byte budgets.
    x4 = jax.random.normal(k4, (16, 2, 192), dtype=jnp.float32)
    out4 = jax.block_until_ready(
        model_forward(x4, out_block_bytes=16 << 10, in_block_bytes=16 << 10))
    assert jnp.allclose(out4, _reference(x4), atol=1e-6), "mismatch (col-tiled path)"

    # 5) bf16, exercising the 16-row sublane base on the 3-D row path.
    x5 = jax.random.normal(k5, (16, 3, 128), dtype=jnp.bfloat16)
    out5 = jax.block_until_ready(model_forward(x5))
    ref5 = _reference(x5.astype(jnp.float32))
    assert jnp.allclose(out5.astype(jnp.float32), ref5, atol=1e-2), "mismatch (bf16)"

    print("KERNEL_OK")
</pallas_src>

<mosaic_0001>
module attributes {stable_mosaic.version = 11 : i64} {
  func.func @_fallback_kernel(%arg0: i32, %arg1: memref<2x3x4xf32, #tpu.memory_space<vmem>>, %arg2: memref<2x3x3x4xf32, #tpu.memory_space<vmem>>) attributes {dimension_semantics = [#tpu.dimension_semantics<parallel>], iteration_bounds = array<i64: 1>, scalar_prefetch = 0 : i64, scratch_operands = 0 : i64, tpu.core_type = #tpu.core_type<tc>, window_params = [{transform_indices = @transform_0, window_bounds = array<i64: 2, 3, 4>}, {transform_indices = @transform_1, window_bounds = array<i64: 2, 3, 3, 4>}]} {
    %c0 = arith.constant 0 : index
    %c0_0 = arith.constant 0 : index
    %c0_1 = arith.constant 0 : index
    %0 = vector.load %arg1[%c0, %c0_0, %c0_1] : memref<2x3x4xf32, #tpu.memory_space<vmem>>, vector<2x3x4xf32>
    %1 = math.tanh %0 : vector<2x3x4xf32>
    %cst = arith.constant 0.000000e+00 : f32
    %2 = vector.broadcast %cst : f32 to vector<2x3x4xf32>
    %3 = arith.maximumf %1, %2 : vector<2x3x4xf32>
    %4 = vector.shape_cast %3 : vector<2x3x4xf32> to vector<2x1x3x4xf32>
    %5 = vector.shape_cast %4 : vector<2x1x3x4xf32> to vector<2x1x3x4xf32>
    %6 = vector.broadcast %5 : vector<2x1x3x4xf32> to vector<2x3x3x4xf32>
    %c0_2 = arith.constant 0 : index
    %c0_3 = arith.constant 0 : index
    %c0_4 = arith.constant 0 : index
    %c0_5 = arith.constant 0 : index
    %7 = vector.load %arg2[%c0_2, %c0_3, %c0_4, %c0_5] : memref<2x3x3x4xf32, #tpu.memory_space<vmem>>, vector<2x3x3x4xf32>
    tpu.vector_store %arg2[%c0_2, %c0_3, %c0_4, %c0_5], %6 {strides = array<i32>} : memref<2x3x3x4xf32, #tpu.memory_space<vmem>>, vector<2x3x3x4xf32>,
    return
  }
  func.func @transform_0(%arg0: i32) -> (i32, i32, i32) {
    %c0_i32 = arith.constant 0 : i32
    %c0_i32_0 = arith.constant 0 : i32
    %c0_i32_1 = arith.constant 0 : i32
    return %arg0, %c0_i32, %c0_i32_0 : i32, i32, i32
  }
  func.func @transform_1(%arg0: i32) -> (i32, i32, i32, i32) {
    %c0_i32 = arith.constant 0 : i32
    %c0_i32_0 = arith.constant 0 : i32
    %c0_i32_1 = arith.constant 0 : i32
    %c0_i32_2 = arith.constant 0 : i32
    return %arg0, %c0_i32, %c0_i32_0, %c0_i32_1 : i32, i32, i32, i32
  }
}

</mosaic_0001>

<bundles_post_ra>
// kernel: tpu_custom_call.1
= control target key start
LH: loop header
LB: loop body
LE: loop exit
PB: predicated region body
PF: predicated region fallthrough
CT: control target
= control target key end

     0   :  { %vm14_vm0 = vcmask 26624   ;;  %s63_s0 = inlined_call_operand.vmem [shape: f32[2,3,4], index: 0, kind: input, shape index: {}]   ;;  %s64_s1 = inlined_call_operand.vmem [shape: f32[2,3,3,4], index: 1, kind: output, shape index: {}]  }
   0x1   :  { %v8_v0 = vld [vmem:[%s63_s0] sm:$0x7]  ;;  %v9_v1 = vld [vmem:[%s63_s0 + $0x4] sm:$0x7] }
   0x2   :  { %25 = vtanh.f32 %v8_v0 }
   0x3   :  { %27 = vtanh.f32 %v9_v1 }
   0xc   :  { %v26_v2 = vpop.eup %25 }
   0xd   :  { %v28_v3 = vpop.eup %27  ;;  %v12_v4 = vmax.f32 %v26_v2, 0.0 }
   0xe   :  { %v13_v5 = vmax.f32 %v28_v3, 0.0 }
   0xf   :  { %15 = vst.msk [vmem:[%s64_s1] sm:$0x7] %vm14_vm0, %v12_v4  ;;  %16 = vst.msk [vmem:[%s64_s1 + $0x4] sm:$0x7] %vm14_vm0, %v12_v4 }
  0x10   :  { %17 = vst.msk [vmem:[%s64_s1 + $0x8] sm:$0x7] %vm14_vm0, %v12_v4  ;;  %18 = vst.msk [vmem:[%s64_s1 + $0xc] sm:$0x7] %vm14_vm0, %v13_v5 }
  0x11   :  { %19 = vst.msk [vmem:[%s64_s1 + $0x10] sm:$0x7] %vm14_vm0, %v13_v5  ;;  %20 = vst.msk [vmem:[%s64_s1 + $0x14] sm:$0x7] %vm14_vm0, %v13_v5 }

</bundles_post_ra>
